<compile_context>
chip_gen: v7x
topology: tpu7x:2x2x1
jax: 0.10.0
libtpu: 0.0.40
codegen_flags: <defaults>
</compile_context>

<pallas_src>
import functools

import jax
import jax.numpy as jnp
from jax.experimental import pallas as pl
from jax.experimental.pallas import tpu as pltpu


def _round_up(n, m):
    return ((n + m - 1) // m) * m


# ----------------------------- kernels ------------------------------------


def _mlp_eval_kernel(x_ref, w_ref, b_ref, o_ref, acc_ref):
    """acc += x @ W over K; at k==last: y = silu(acc + b); dropout = identity."""
    k = pl.program_id(2)

    @pl.when(k == 0)
    def _():
        acc_ref[...] = jnp.zeros_like(acc_ref)

    acc_ref[...] += jnp.dot(
        x_ref[...], w_ref[...], preferred_element_type=jnp.float32
    )

    @pl.when(k == pl.num_programs(2) - 1)
    def _():
        y = acc_ref[...] + b_ref[...]
        y = y * jax.nn.sigmoid(y)  # SiLU in f32
        o_ref[...] = y.astype(o_ref.dtype)


def _mlp_train_kernel(x_ref, w_ref, b_ref, bits_ref, o_ref, acc_ref, *,
                      keep_threshold, keep_scale):
    """Same as eval, plus inverted-scaling dropout via uint32 threshold compare."""
    k = pl.program_id(2)

    @pl.when(k == 0)
    def _():
        acc_ref[...] = jnp.zeros_like(acc_ref)

    acc_ref[...] += jnp.dot(
        x_ref[...], w_ref[...], preferred_element_type=jnp.float32
    )

    @pl.when(k == pl.num_programs(2) - 1)
    def _():
        y = acc_ref[...] + b_ref[...]
        y = y * jax.nn.sigmoid(y)  # SiLU in f32
        keep = bits_ref[...] >= jnp.uint32(keep_threshold)
        y = jnp.where(keep, y * jnp.float32(keep_scale), jnp.zeros_like(y))
        o_ref[...] = y.astype(o_ref.dtype)


# ----------------------------- wrapper -------------------------------------


def mlp_block(x, w, b, *, training=False, drop_p=0.1, rng_key=None,
              tm=256, tn=512, tk=1024):
    """Pallas implementation of MLPBlock.forward.

    x: (B, in_features) float32
    w: (in_features, out_features) float32   (PyTorch weight transposed)
    b: (out_features,) float32
    """
    B, IN = x.shape
    IN2, OUT = w.shape
    assert IN == IN2
    assert b.shape == (OUT,)

    # Tile sizes: TM multiple of 16 (bf16 sublane), TN/TK multiples of 128
    # (lane-dense stores / (8,128) layout), capped by the padded problem size.
    TM = min(tm, _round_up(B, 16))
    TN = min(tn, _round_up(OUT, 128))
    TK = min(tk, _round_up(IN, 128))
    Bp = _round_up(B, TM)
    Np = _round_up(OUT, TN)
    Kp = _round_up(IN, TK)

    # bf16 MXU operands; zero-pad to tile-aligned shapes (zeros contribute 0
    # to the matmul, padded rows/cols are sliced away at the end).
    xp = jnp.pad(x, ((0, Bp - B), (0, Kp - IN))).astype(jnp.bfloat16)
    wp = jnp.pad(w, ((0, Kp - IN), (0, Np - OUT))).astype(jnp.bfloat16)
    bp = jnp.pad(b, (0, Np - OUT)).astype(jnp.float32).reshape(1, Np)

    grid = (Bp // TM, Np // TN, Kp // TK)

    x_spec = pl.BlockSpec((TM, TK), lambda i, j, k: (i, k))
    w_spec = pl.BlockSpec((TK, TN), lambda i, j, k: (k, j))
    b_spec = pl.BlockSpec((1, TN), lambda i, j, k: (0, j))
    mn_spec = pl.BlockSpec((TM, TN), lambda i, j, k: (i, j))  # out / bits

    out_shape = jax.ShapeDtypeStruct((Bp, Np), x.dtype)
    scratch = [pltpu.VMEM((TM, TN), jnp.float32)]

    cost = pl.CostEstimate(
        flops=2 * B * IN * OUT,
        transcendentals=B * OUT,
        bytes_accessed=(xp.size * 2 + wp.size * 2 + bp.size * 4
                        + Bp * Np * x.dtype.itemsize),
    )
    cparams = pltpu.CompilerParams(
        dimension_semantics=("parallel", "parallel", "arbitrary"),
        vmem_limit_bytes=32 * 1024 * 1024,
    )

    if not training:
        out = pl.pallas_call(
            _mlp_eval_kernel,
            out_shape=out_shape,
            grid=grid,
            in_specs=[x_spec, w_spec, b_spec],
            out_specs=mn_spec,
            scratch_shapes=scratch,
            compiler_params=cparams,
            cost_estimate=cost,
        )(xp, wp, bp)
        return out[:B, :OUT]

    assert 0.0 <= drop_p < 1.0
    if rng_key is None:
        rng_key = jax.random.PRNGKey(0)
    # TODO(synk): torch's dropout RNG stream cannot be reproduced bit-exactly;
    # random bits come from jax.random on the host (the on-chip pltpu PRNG has
    # no interpret-mode lowering) and the mask + 1/(1-p) scale is fused in-kernel.
    bits = jax.random.bits(rng_key, (Bp, Np), dtype=jnp.uint32)
    keep_threshold = min(int(round(drop_p * (1 << 32))), (1 << 32) - 1)
    keep_scale = 1.0 / (1.0 - drop_p)

    kernel = functools.partial(
        _mlp_train_kernel,
        keep_threshold=keep_threshold,
        keep_scale=keep_scale,
    )
    out = pl.pallas_call(
        kernel,
        out_shape=out_shape,
        grid=grid,
        in_specs=[x_spec, w_spec, b_spec, mn_spec],
        out_specs=mn_spec,
        scratch_shapes=scratch,
        compiler_params=cparams,
        cost_estimate=cost,
    )(xp, wp, bp, bits)
    return out[:B, :OUT]


# ------------------------------- main ---------------------------------------


if __name__ == "__main__":
    key = jax.random.PRNGKey(0)
    kx, kw, kb, kd = jax.random.split(key, 4)

    B, IN, OUT = 8, 32, 64  # small shapes consistent with nn.Linear(in, out)

    # Deterministic init mimicking nn.Linear's uniform(-1/sqrt(in), 1/sqrt(in)).
    bound = 1.0 / (IN ** 0.5)
    w = jax.random.uniform(kw, (IN, OUT), jnp.float32, -bound, bound)
    b = jax.random.uniform(kb, (OUT,), jnp.float32, -bound, bound)
    x = jax.random.normal(kx, (B, IN), jnp.float32)

    # Eval mode (dropout = identity) -- matches torch module in .eval().
    out = mlp_block(x, w, b, training=False)
    out = jax.block_until_ready(out)

    # Reference (same bf16 operands, f32 accumulate, as the kernel).
    y_ref = jnp.dot(x.astype(jnp.bfloat16), w.astype(jnp.bfloat16),
                    preferred_element_type=jnp.float32) + b
    y_ref = y_ref * jax.nn.sigmoid(y_ref)
    assert out.shape == (B, OUT)
    assert jnp.allclose(out, y_ref, atol=1e-3, rtol=1e-3), "eval-mode mismatch"

    # Training-mode dropout path (stochastic per key, fused in-kernel).
    out_train = mlp_block(x, w, b, training=True, drop_p=0.1, rng_key=kd)
    out_train = jax.block_until_ready(out_train)
    assert out_train.shape == (B, OUT)
    assert bool(jnp.all(jnp.isfinite(out_train)))

    print("KERNEL_OK")
</pallas_src>

<mosaic_0001>
module attributes {stable_mosaic.version = 11 : i64} {
  func.func @_mlp_eval_kernel(%arg0: i32, %arg1: i32, %arg2: i32, %arg3: memref<16x128xbf16, #tpu.memory_space<vmem>>, %arg4: memref<128x128xbf16, #tpu.memory_space<vmem>>, %arg5: memref<1x128xf32, #tpu.memory_space<vmem>>, %arg6: memref<16x128xf32, #tpu.memory_space<vmem>>, %arg7: memref<16x128xf32, #tpu.memory_space<vmem>>) attributes {dimension_semantics = [#tpu.dimension_semantics<parallel>, #tpu.dimension_semantics<parallel>, #tpu.dimension_semantics<arbitrary>], iteration_bounds = array<i64: 1, 1, 1>, scalar_prefetch = 0 : i64, scratch_operands = 1 : i64, tpu.core_type = #tpu.core_type<tc>, window_params = [{transform_indices = @transform_0, window_bounds = array<i64: 16, 128>}, {transform_indices = @transform_1, window_bounds = array<i64: 128, 128>}, {transform_indices = @transform_2, window_bounds = array<i64: 1, 128>}, {transform_indices = @transform_3, window_bounds = array<i64: 16, 128>}]} {
    %c0_i32 = arith.constant 0 : i32
    %0 = arith.cmpi eq, %arg2, %c0_i32 : i32
    %1 = arith.extui %0 : i1 to i32
    %c0_i32_0 = arith.constant 0 : i32
    %2 = arith.cmpi ne, %1, %c0_i32_0 : i32
    scf.if %2 {
      %cst_10 = arith.constant 0.000000e+00 : f32
      %12 = vector.broadcast %cst_10 : f32 to vector<16x128xf32>
      %c0_11 = arith.constant 0 : index
      %c0_12 = arith.constant 0 : index
      %13 = vector.load %arg7[%c0_11, %c0_12] : memref<16x128xf32, #tpu.memory_space<vmem>>, vector<16x128xf32>
      tpu.vector_store %arg7[%c0_11, %c0_12], %12 {strides = array<i32>} : memref<16x128xf32, #tpu.memory_space<vmem>>, vector<16x128xf32>,
    } else {
    }
    %c0 = arith.constant 0 : index
    %c0_1 = arith.constant 0 : index
    %3 = vector.load %arg7[%c0, %c0_1] : memref<16x128xf32, #tpu.memory_space<vmem>>, vector<16x128xf32>
    %c0_2 = arith.constant 0 : index
    %c0_3 = arith.constant 0 : index
    %4 = vector.load %arg3[%c0_2, %c0_3] : memref<16x128xbf16, #tpu.memory_space<vmem>>, vector<16x128xbf16>
    %c0_4 = arith.constant 0 : index
    %c0_5 = arith.constant 0 : index
    %5 = vector.load %arg4[%c0_4, %c0_5] : memref<128x128xbf16, #tpu.memory_space<vmem>>, vector<128x128xbf16>
    %cst = arith.constant dense<0.000000e+00> : vector<16x128xf32>
    %6 = tpu.matmul %4, %5, %cst {dimension_numbers = #tpu.dot_dimension_numbers<[1], [0], [0], [1], [0, 0, 1, 1], [], []>} : vector<16x128xbf16>, vector<128x128xbf16>, vector<16x128xf32> -> vector<16x128xf32>
    %7 = arith.addf %3, %6 : vector<16x128xf32>
    %c0_6 = arith.constant 0 : index
    %c0_7 = arith.constant 0 : index
    %8 = vector.load %arg7[%c0_6, %c0_7] : memref<16x128xf32, #tpu.memory_space<vmem>>, vector<16x128xf32>
    tpu.vector_store %arg7[%c0_6, %c0_7], %7 {strides = array<i32>} : memref<16x128xf32, #tpu.memory_space<vmem>>, vector<16x128xf32>,
    %c0_i32_8 = arith.constant 0 : i32
    %9 = arith.cmpi eq, %arg2, %c0_i32_8 : i32
    %10 = arith.extui %9 : i1 to i32
    %c0_i32_9 = arith.constant 0 : i32
    %11 = arith.cmpi ne, %10, %c0_i32_9 : i32
    scf.if %11 {
      %c0_10 = arith.constant 0 : index
      %c0_11 = arith.constant 0 : index
      %12 = vector.load %arg7[%c0_10, %c0_11] : memref<16x128xf32, #tpu.memory_space<vmem>>, vector<16x128xf32>
      %c0_12 = arith.constant 0 : index
      %c0_13 = arith.constant 0 : index
      %13 = vector.load %arg5[%c0_12, %c0_13] : memref<1x128xf32, #tpu.memory_space<vmem>>, vector<1x128xf32>
      %14 = vector.broadcast %13 : vector<1x128xf32> to vector<16x128xf32>
      %15 = arith.addf %12, %14 : vector<16x128xf32>
      %16 = arith.negf %15 : vector<16x128xf32>
      %17 = math.exp %16 : vector<16x128xf32>
      %cst_14 = arith.constant 1.000000e+00 : f32
      %18 = vector.broadcast %cst_14 : f32 to vector<16x128xf32>
      %19 = arith.addf %18, %17 : vector<16x128xf32>
      %20 = arith.divf %18, %19 : vector<16x128xf32>
      %21 = arith.mulf %15, %20 : vector<16x128xf32>
      %c0_15 = arith.constant 0 : index
      %c0_16 = arith.constant 0 : index
      %22 = vector.load %arg6[%c0_15, %c0_16] : memref<16x128xf32, #tpu.memory_space<vmem>>, vector<16x128xf32>
      tpu.vector_store %arg6[%c0_15, %c0_16], %21 {strides = array<i32>} : memref<16x128xf32, #tpu.memory_space<vmem>>, vector<16x128xf32>,
    } else {
    }
    return
  }
  func.func @transform_0(%arg0: i32, %arg1: i32, %arg2: i32) -> (i32, i32) {
    %c0_i32 = arith.constant 0 : i32
    return %arg0, %arg2 : i32, i32
  }
  func.func @transform_1(%arg0: i32, %arg1: i32, %arg2: i32) -> (i32, i32) {
    %c0_i32 = arith.constant 0 : i32
    return %arg2, %arg1 : i32, i32
  }
  func.func @transform_2(%arg0: i32, %arg1: i32, %arg2: i32) -> (i32, i32) {
    %c0_i32 = arith.constant 0 : i32
    %c0_i32_0 = arith.constant 0 : i32
    return %c0_i32, %arg1 : i32, i32
  }
  func.func @transform_3(%arg0: i32, %arg1: i32, %arg2: i32) -> (i32, i32) {
    %c0_i32 = arith.constant 0 : i32
    return %arg0, %arg1 : i32, i32
  }
}

</mosaic_0001>

<bundles_post_ra>
// kernel: tpu_custom_call.1
= control target key start
LH: loop header
LB: loop body
LE: loop exit
PB: predicated region body
PF: predicated region fallthrough
CT: control target
= control target key end

     0   :  { %8 = vsyncpa [#allocation4], 0  ;;  %s424_s0 = inlined_call_operand.hbm [shape: bf16[16,128], index: 0, kind: input, shape index: {}]   ;;  %s425_s1 = inlined_call_operand.hbm [shape: bf16[128,128], index: 1, kind: input, shape index: {}]   ;;  %s426_s2 = inlined_call_operand.vmem [shape: f32[1,128], index: 2, kind: input, shape index: {}]   ;;  %s427_s3 = inlined_call_operand.hbm [shape: f32[16,128], index: 3, kind: output, shape index: {}]  }
   0x1   :  { %9 = vsyncpa [#allocation7], 0 }
   0x2   :  { %10 = vsyncpa [#allocation5], 0  ;;  %s356_s12 = smov [#allocation3]   ;;  %s284_s16 = scalar_lea.hbm %s424_s0, 128 }
   0x3   :  { %s16_s13 = sshll.u32 %s356_s12, 4  ;;  %p285_p0 = scmp.ne.s32.totalorder %s424_s0, %s284_s16  ;;  %s17_s13 = int_to_ptr.vmem [resolvable:$true] %s16_s13 }
   0x4   :  { %p288_p1 = scmp.lt.u32.totalorder %s284_s16, %s424_s0 }
   0x6   :  { %p290_p2 = pnand %p288_p1, %p285_p0 }
   0x8   :  { %293 = shalt.err (!%p290_p2)
}
   0x9   :  { %s294_s21 = scalar_lea.vmem %s17_s13, 128  ;;  %p299_p4 = scmp.lt.s32.totalorder %s17_s13, %s17_s13 }
   0xa   :  { %p295_p3 = scmp.ne.s32.totalorder %s17_s13, %s294_s21  ;;  %p300_p5 = scmp.lt.s32.totalorder %s294_s21, %s294_s21 }
   0xc   :  { %p301_p6 = por %p300_p5, %p299_p4 }
   0xe   :  { %p302_p7 = pnand %p301_p6, %p295_p3 }
  0x10   :  { %305 = shalt.err (!%p302_p7)
}
  0x11   :  { %s357_s22 = smov 64   ;;  %s358_s23 = smov 4  }
  0x12   :  { %22 = dma.hbm_to_vmem [thread:$0]  %s424_s0, 128, %s17_s13, [#allocation4], %s357_s22, %s357_s22, %s358_s23  }
  0x13   :  { %s359_s26 = smov [#allocation6]   ;;  %s306_s30 = scalar_lea.hbm %s425_s1, 1024 }
  0x14   :  { %s28_s27 = sshll.u32 %s359_s26, 4  ;;  %p307_p8 = scmp.ne.s32.totalorder %s425_s1, %s306_s30  ;;  %s29_s27 = int_to_ptr.vmem [resolvable:$true] %s28_s27 }
  0x15   :  { %p310_p9 = scmp.lt.u32.totalorder %s306_s30, %s425_s1 }
  0x17   :  { %p312_p10 = pnand %p310_p9, %p307_p8 }
  0x19   :  { %315 = shalt.err (!%p312_p10)
}
  0x1a   :  { %s316_s8 = scalar_lea.vmem %s29_s27, 1024  ;;  %p321_p12 = scmp.lt.s32.totalorder %s29_s27, %s29_s27 }
  0x1b   :  { %p317_p11 = scmp.ne.s32.totalorder %s29_s27, %s316_s8  ;;  %p322_p13 = scmp.lt.s32.totalorder %s316_s8, %s316_s8 }
  0x1d   :  { %p323_p0 = por %p322_p13, %p321_p12 }
  0x1f   :  { %p324_p1 = pnand %p323_p0, %p317_p11 }
  0x21   :  { %327 = shalt.err (!%p324_p1)
}
  0x22   :  { %34 = dma.hbm_to_vmem [thread:$0]  %s425_s1, 1024, %s29_s27, [#allocation7], %s357_s22, %s357_s22, %s358_s23  }
  0x23   :  { %350 = dma.done.wait [#allocation4], 128  }
  0x24   :  { %351 = vsyncadd [#allocation4], 4294967168 }
  0x25   :  { %352 = dma.done.wait [#allocation7], 1024  }
  0x26   :  { %353 = vsyncadd [#allocation7], 4294966272  ;;  %v360_v0 = vmov 0.0   ;;  %vm361_vm0 = vmmov 0   ;;  %v267_v1 = vld [vmem:[#allocation6] sm:$0xff]   ;;  %v268_v2 = vld [vmem:[#allocation6 + $0x8] sm:$0xff]  }
  0x27   :  { %238 = vmatprep.subr.bf16.mxu0 %v360_v0  ;;  %254 = vmatprep.mubr.msk.bf16.mxu0 %vm361_vm0, %v360_v0  ;;  %v269_v3 = vld [vmem:[#allocation6 + $0x10] sm:$0xff]   ;;  %v270_v4 = vld [vmem:[#allocation6 + $0x18] sm:$0xff]   ;;  %v271_v5 = vld [vmem:[#allocation6 + $0x20] sm:$0xff]   ;;  %s362_s11 = smov [#allocation8]  }
  0x28   :  { %239 = vmatpush3.bf16.msra.mxu0 %v267_v1  ;;  %v272_v6 = vld [vmem:[#allocation6 + $0x28] sm:$0xff]   ;;  %v273_v7 = vld [vmem:[#allocation6 + $0x30] sm:$0xff]   ;;  %v274_v8 = vld [vmem:[#allocation6 + $0x38] sm:$0xff]   ;;  %s204_s12 = sshll.u32 %s362_s11, 4  ;;  %s205_s12 = int_to_ptr.vmem [resolvable:$true] %s204_s12 }
  0x29   :  { %240 = vmatprep.subr.bf16.mxu0 %v360_v0  ;;  %v275_v9 = vld [vmem:[#allocation3] sm:$0xff]   ;;  %p333_p3 = scmp.lt.s32.totalorder %s205_s12, %s205_s12 }
  0x2a   :  { %v226_v10 = vld [vmem:[%s426_s2] ss:$0 sm:$0xff]  ;;  %s328_s2 = scalar_lea.vmem %s205_s12, 256 }
  0x2b   :  { %p329_p2 = scmp.ne.s32.totalorder %s205_s12, %s328_s2  ;;  %p334_p4 = scmp.lt.s32.totalorder %s328_s2, %s328_s2 }
  0x2c   :  { %241 = vmatpush3.bf16.msra.mxu0 %v268_v2 }
  0x2d   :  { %242 = vmatprep.subr.bf16.mxu0 %v360_v0  ;;  %p335_p5 = por %p334_p4, %p333_p3 }
  0x2f   :  { %p336_p6 = pnand %p335_p5, %p329_p2 }
  0x30   :  { %243 = vmatpush3.bf16.msra.mxu0 %v269_v3 }
  0x31   :  { %244 = vmatprep.subr.bf16.mxu0 %v360_v0 }
  0x34   :  { %245 = vmatpush3.bf16.msra.mxu0 %v270_v4 }
  0x35   :  { %246 = vmatprep.subr.bf16.mxu0 %v360_v0 }
  0x38   :  { %247 = vmatpush3.bf16.msra.mxu0 %v271_v5 }
  0x39   :  { %248 = vmatprep.subr.bf16.mxu0 %v360_v0 }
  0x3c   :  { %249 = vmatpush3.bf16.msra.mxu0 %v272_v6 }
  0x3d   :  { %250 = vmatprep.subr.bf16.mxu0 %v360_v0 }
  0x40   :  { %251 = vmatpush3.bf16.msra.mxu0 %v273_v7 }
  0x41   :  { %252 = vmatprep.subr.bf16.mxu0 %v360_v0 }
  0x44   :  { %253 = vmatpush3.bf16.msra.mxu0 %v274_v8 }
  0x47   :  { %255 = vmatmul.mubr.bf16.vlgmr.msra.gmra.mrb[0].mxu0 %v275_v9 }
 0x11a   :  { %v158_v11 = vpop.f32.mrb[0].mxu0 }
 0x11b   :  { %v181_v12 = vadd.f32 %v226_v10, %v158_v11  ;;  %v256_v13 = vpop.f32.mrb[1].mxu0 }
 0x11c   :  { %v161_v14 = vpop.f32.mrb[2].mxu0 }
 0x11d   :  { %v227_v15 = vmul.f32 -1.442695, %v181_v12  ;;  %v182_v16 = vadd.f32 %v226_v10, %v161_v14  ;;  %v257_v17 = vpop.f32.mrb[3].mxu0 }
 0x11f   :  { %276 = vpow2.f32 %v227_v15  ;;  %v228_v18 = vmul.f32 -1.442695, %v182_v16 }
 0x121   :  { %278 = vpow2.f32 %v228_v18 }
 0x129   :  { %v277_v19 = vpop.eup %276 }
 0x12a   :  { %v189_v20 = vadd.f32 1.0, %v277_v19 }
 0x12b   :  { %v279_v21 = vpop.eup %278 }
 0x12c   :  { %280 = vrcp.f32 %v189_v20  ;;  %v190_v22 = vadd.f32 1.0, %v279_v21 }
 0x12e   :  { %282 = vrcp.f32 %v190_v22 }
 0x136   :  { %v281_v23 = vpop.eup %280 }
 0x137   :  { %v195_v24 = vmul.f32 %v281_v23, %v181_v12 }
 0x138   :  { %v283_v25 = vpop.eup %282 }
 0x139   :  { %197 = vst [vmem:[#allocation8] sm:$0xff] %v195_v24  ;;  %v196_v26 = vmul.f32 %v283_v25, %v182_v16 }
 0x13b   :  { %198 = vst [vmem:[#allocation8 + $0x8] sm:$0xff] %v196_v26 }
 0x13c   :  { %339 = shalt.err (!%p336_p6)
}
 0x13d   :  { %s340_s15 = scalar_lea.hbm %s427_s3, 256 }
 0x13e   :  { %p341_p7 = scmp.ne.s32.totalorder %s427_s3, %s340_s15  ;;  %p344_p8 = scmp.lt.u32.totalorder %s340_s15, %s427_s3 }
 0x140   :  { %p346_p9 = pnand %p344_p8, %p341_p7 }
 0x142   :  { %349 = shalt.err (!%p346_p9)
}
 0x143   :  { %s363_s20 = smov 128   ;;  %s364_s21 = smov 8  }
 0x144   :  { %210 = dma.vmem_to_hbm [thread:$0]  %s205_s12, 256, %s427_s3, [#allocation5], %s363_s20, %s363_s20, %s364_s21  }
 0x145   :  { %354 = dma.done.wait [#allocation5], 256  }
 0x146   :  { %355 = vsyncadd [#allocation5], 4294967040 }
 0x147   :  { %214 = vsyncpa [#allocation4], 1 }
 0x148   :  { %215 = vsyncpa [#allocation7], 1 }
 0x149   :  { %216 = vsyncpa [#allocation5], 1 }

</bundles_post_ra>
